<compile_context>
chip_gen: v7x
topology: tpu7x:2x2x1
jax: 0.10.0
libtpu: 0.0.40
codegen_flags: <defaults>
</compile_context>

<pallas_src>
import functools

import jax
import jax.numpy as jnp
from jax.experimental import pallas as pl
from jax.experimental.pallas import tpu as pltpu

NUM_CLASSES = 10
D_IN = 28 * 28          # 784 — streamed at native width (no wrapper pad pass)
N_PAD = 128             # lane-dense logits width (10 real classes + 118 pad lanes)


def mlp_kernel(x_ref, w1_ref, b1_ref, w2_ref, b2_ref, w3_ref, b3_ref, o_ref,
               *, compute_dtype):
    # Cast the streamed x tile in VMEM (no extra HBM pass in the wrapper).
    x = x_ref[...].astype(compute_dtype)

    # ---- linear1 + ReLU (MXU matmul, f32 accumulation) ----
    h1 = jnp.dot(x, w1_ref[...], preferred_element_type=jnp.float32)
    h1 = jnp.maximum(h1 + b1_ref[...], 0.0)           # b1 is (1, U), f32

    # ---- linear2 + ReLU ----
    h2 = jnp.dot(h1.astype(compute_dtype), w2_ref[...],
                 preferred_element_type=jnp.float32)
    h2 = jnp.maximum(h2 + b2_ref[...], 0.0)

    # ---- linear3 (output padded to N_PAD lanes for lane-dense, unmasked stores) ----
    logits = jnp.dot(h2.astype(compute_dtype), w3_ref[...],
                     preferred_element_type=jnp.float32)
    logits = logits + b3_ref[...]

    # ---- numerically-stable log-softmax over the 10 valid classes ----
    # Pad lanes are masked to -inf so they contribute 0 to the denominator.
    lane = jax.lax.broadcasted_iota(jnp.int32, logits.shape, dimension=1)
    masked = jnp.where(lane < NUM_CLASSES, logits, -jnp.inf)
    m = jnp.max(masked, axis=-1, keepdims=True)
    shifted = masked - m                               # pad lanes stay -inf
    lse = jnp.log(jnp.sum(jnp.exp(shifted), axis=-1, keepdims=True))
    o_ref[...] = (shifted - lse).astype(o_ref.dtype)


def mlp_forward(x, params, *, tm=2048, compute_dtype=jnp.bfloat16,
                out_dtype=jnp.float32):
    """x: (B, S, 784) -> (B, S, 10) log-probabilities.

    compute_dtype=jnp.bfloat16 (default, recommended on v5e/v6e/v7x) keeps the
    MXU dots in bf16 while all elementwise math / accumulation stays f32.  x is
    streamed in whatever dtype it arrives in (f32 works; bf16 from the upstream
    producer halves the dominant HBM stream).  out_dtype=jnp.bfloat16 halves the
    output writeback bytes if the consumer tolerates it.
    """
    w1, b1, w2, b2, w3, b3 = params
    B, S, D = x.shape
    assert D == D_IN
    U = w1.shape[1]
    M = B * S
    x2d = x.reshape(M, D)                 # free view, no HBM copy; native dtype

    # Tiny, one-time weight preps (no pass over x):
    w1c = w1.astype(compute_dtype)
    w2c = w2.astype(compute_dtype)
    w3p = jnp.pad(w3, ((0, 0), (0, N_PAD - NUM_CLASSES))).astype(compute_dtype)
    b3p = jnp.pad(b3, ((0, 0), (0, N_PAD - NUM_CLASSES)))   # biases stay f32

    # Row tile: multiple of 8, at most `tm`, and never more than ~half of M so a
    # multi-tile grid exists for v7x's two TensorCores.  No M padding: the final
    # partial block is handled by Pallas (OOB output rows are dropped).
    tm = max(8, (tm // 8) * 8)
    half_m = pl.cdiv(pl.cdiv(M, 2), 8) * 8
    tm_eff = max(8, min(tm, half_m))
    grid = (pl.cdiv(M, tm_eff),)

    x_itemsize = jnp.dtype(x2d.dtype).itemsize
    w_itemsize = jnp.dtype(compute_dtype).itemsize
    out_itemsize = jnp.dtype(out_dtype).itemsize
    weight_elems = D * U + U * U + U * N_PAD
    cost = pl.CostEstimate(
        flops=2 * M * weight_elems + 6 * M * N_PAD,
        transcendentals=M * (N_PAD + 1),
        bytes_accessed=(M * D * x_itemsize            # x stream (dominant)
                        + weight_elems * w_itemsize   # resident weights
                        + (2 * U + N_PAD) * 4         # biases
                        + M * N_PAD * out_itemsize))  # output writeback

    const = lambda i: (0, 0)   # weights/biases: same block every step -> resident

    def build_call(weight_pipeline_mode):
        def resident_spec(shape):
            if weight_pipeline_mode is None:
                return pl.BlockSpec(shape, const)
            return pl.BlockSpec(shape, const, pipeline_mode=weight_pipeline_mode)

        return pl.pallas_call(
            functools.partial(mlp_kernel, compute_dtype=compute_dtype),
            out_shape=jax.ShapeDtypeStruct((M, N_PAD), out_dtype),
            grid=grid,
            in_specs=[
                # x: streamed rows at native K=784 (last dim == full array dim).
                pl.BlockSpec((tm_eff, D), lambda i: (i, 0)),
                resident_spec((D, U)),        # w1
                resident_spec((1, U)),        # b1 (f32)
                resident_spec((U, U)),        # w2
                resident_spec((1, U)),        # b2 (f32)
                resident_spec((U, N_PAD)),    # w3 (cols padded to 128)
                resident_spec((1, N_PAD)),    # b3 (cols padded to 128, f32)
            ],
            out_specs=pl.BlockSpec((tm_eff, N_PAD), lambda i: (i, 0)),
            compiler_params=pltpu.CompilerParams(
                dimension_semantics=("parallel",)),   # shard row tiles on v7x's 2 TCs
            cost_estimate=cost,
        )

    try:
        # Resident operands never re-DMA; a single buffer avoids wasting VMEM
        # on a useless second copy (matters for large hidden widths on v7x).
        out2d = build_call(pl.Buffered(1))(x2d, w1c, b1, w2c, b2, w3p, b3p)
    except Exception:
        # Fallback for environments where single-buffered pipeline_mode is
        # rejected; costs only a few extra KiB of VMEM at U=32.
        out2d = build_call(None)(x2d, w1c, b1, w2c, b2, w3p, b3p)

    # NOTE: this slice is a small extra pass over the (M, 128) output; fusing the
    # downstream consumer (NLL / argmax) into the kernel would remove it.
    return out2d[:, :NUM_CLASSES].reshape(B, S, NUM_CLASSES)


def init_params(key, U):
    """Deterministic init mirroring torch.nn.Linear shapes.

    PyTorch stores weight as (out, in); here we store (in, out) so the kernel
    does x @ W directly.  Uniform(-1/sqrt(fan_in), 1/sqrt(fan_in)), like torch.
    """
    k1, k2, k3, k4, k5, k6 = jax.random.split(key, 6)
    D = D_IN

    def u(k, shape, fan_in):
        bound = 1.0 / jnp.sqrt(fan_in)
        return jax.random.uniform(k, shape, jnp.float32, -bound, bound)

    w1 = u(k1, (D, U), D)
    b1 = u(k2, (1, U), D)
    w2 = u(k3, (U, U), U)
    b2 = u(k4, (1, U), U)
    w3 = u(k5, (U, NUM_CLASSES), U)
    b3 = u(k6, (1, NUM_CLASSES), U)
    return (w1, b1, w2, b2, w3, b3)


def mlp_reference(x, params):
    """Pure-JAX reference for sanity checking."""
    w1, b1, w2, b2, w3, b3 = params
    h = jnp.maximum(x @ w1 + b1[0], 0.0)
    h = jnp.maximum(h @ w2 + b2[0], 0.0)
    logits = h @ w3 + b3[0]
    return jax.nn.log_softmax(logits, axis=2)


if __name__ == "__main__":
    # NOTE: U=32 keeps the MXU lane-starved by construction (model spec); the
    # kernel is HBM-bound, so no MXU-shape tuning is attempted.  If the hidden
    # width ever becomes a free parameter, pick a multiple of 128 (v5e) / 256
    # (v6e/v7x).
    U = 32                      # hidden width
    B, S = 2, 4                 # small batch / sequence; feature dim fixed at 784

    key = jax.random.PRNGKey(0)
    kx, kp = jax.random.split(key)
    x = jax.random.normal(kx, (B, S, D_IN), dtype=jnp.float32)
    params = init_params(kp, U)
    ref = mlp_reference(x, params)

    # f32 compute path.  Tolerance accounts for MXU default-precision f32
    # matmuls possibly differing slightly from the XLA reference dot.
    out = jax.block_until_ready(mlp_forward(x, params, compute_dtype=jnp.float32))
    assert out.shape == (B, S, NUM_CLASSES)
    assert bool(jnp.isfinite(out).all()), "non-finite log-probs in f32 path"
    assert jnp.allclose(out, ref, atol=2e-2, rtol=2e-2), "f32 mismatch vs reference"

    # bf16 streaming path (recommended on v5e/v6e/v7x; bf16 output writeback too).
    out_bf16 = jax.block_until_ready(
        mlp_forward(x, params, compute_dtype=jnp.bfloat16, out_dtype=jnp.bfloat16))
    assert out_bf16.shape == (B, S, NUM_CLASSES)
    assert jnp.allclose(out_bf16.astype(jnp.float32), ref,
                        atol=1.5e-1, rtol=1e-1), "bf16 mismatch vs reference"

    # Ragged M (B*S = 21, not a multiple of the row tile): exercises the
    # no-M-padding partial-final-block path and a >=2-tile grid (v7x 2-TC sharding).
    B2, S2 = 3, 7
    x2 = jax.random.normal(jax.random.PRNGKey(1), (B2, S2, D_IN), dtype=jnp.float32)
    out2 = jax.block_until_ready(mlp_forward(x2, params, compute_dtype=jnp.float32))
    ref2 = mlp_reference(x2, params)
    assert out2.shape == (B2, S2, NUM_CLASSES)
    assert jnp.allclose(out2, ref2, atol=2e-2, rtol=2e-2), "ragged-M mismatch vs reference"

    print("KERNEL_OK")
</pallas_src>

<mosaic_0001>
module attributes {stable_mosaic.version = 11 : i64} {
  func.func @mlp_kernel(%arg0: i32, %arg1: memref<8x784xf32, #tpu.memory_space<vmem>>, %arg2: memref<784x32xf32, #tpu.memory_space<vmem>>, %arg3: memref<1x32xf32, #tpu.memory_space<vmem>>, %arg4: memref<32x32xf32, #tpu.memory_space<vmem>>, %arg5: memref<1x32xf32, #tpu.memory_space<vmem>>, %arg6: memref<32x128xf32, #tpu.memory_space<vmem>>, %arg7: memref<1x128xf32, #tpu.memory_space<vmem>>, %arg8: memref<8x128xf32, #tpu.memory_space<vmem>>) attributes {dimension_semantics = [#tpu.dimension_semantics<parallel>], iteration_bounds = array<i64: 1>, scalar_prefetch = 0 : i64, scratch_operands = 0 : i64, tpu.core_type = #tpu.core_type<tc>, window_params = [{transform_indices = @transform_0, window_bounds = array<i64: 8, 784>}, {pipeline_mode = #tpu.pipeline_mode<synchronous>, transform_indices = @transform_1, window_bounds = array<i64: 784, 32>}, {pipeline_mode = #tpu.pipeline_mode<synchronous>, transform_indices = @transform_2, window_bounds = array<i64: 1, 32>}, {pipeline_mode = #tpu.pipeline_mode<synchronous>, transform_indices = @transform_3, window_bounds = array<i64: 32, 32>}, {pipeline_mode = #tpu.pipeline_mode<synchronous>, transform_indices = @transform_4, window_bounds = array<i64: 1, 32>}, {pipeline_mode = #tpu.pipeline_mode<synchronous>, transform_indices = @transform_5, window_bounds = array<i64: 32, 128>}, {pipeline_mode = #tpu.pipeline_mode<synchronous>, transform_indices = @transform_6, window_bounds = array<i64: 1, 128>}, {transform_indices = @transform_7, window_bounds = array<i64: 8, 128>}]} {
    %c0 = arith.constant 0 : index
    %c0_0 = arith.constant 0 : index
    %0 = vector.load %arg1[%c0, %c0_0] : memref<8x784xf32, #tpu.memory_space<vmem>>, vector<8x784xf32>
    %c0_1 = arith.constant 0 : index
    %c0_2 = arith.constant 0 : index
    %1 = vector.load %arg2[%c0_1, %c0_2] : memref<784x32xf32, #tpu.memory_space<vmem>>, vector<784x32xf32>
    %cst = arith.constant dense<0.000000e+00> : vector<8x32xf32>
    %2 = tpu.matmul %0, %1, %cst {dimension_numbers = #tpu.dot_dimension_numbers<[1], [0], [0], [1], [0, 0, 1, 1], [], []>} : vector<8x784xf32>, vector<784x32xf32>, vector<8x32xf32> -> vector<8x32xf32>
    %c0_3 = arith.constant 0 : index
    %c0_4 = arith.constant 0 : index
    %3 = vector.load %arg3[%c0_3, %c0_4] : memref<1x32xf32, #tpu.memory_space<vmem>>, vector<1x32xf32>
    %4 = vector.broadcast %3 : vector<1x32xf32> to vector<8x32xf32>
    %5 = arith.addf %2, %4 : vector<8x32xf32>
    %cst_5 = arith.constant 0.000000e+00 : f32
    %6 = vector.broadcast %cst_5 : f32 to vector<8x32xf32>
    %7 = arith.maximumf %5, %6 : vector<8x32xf32>
    %c0_6 = arith.constant 0 : index
    %c0_7 = arith.constant 0 : index
    %8 = vector.load %arg4[%c0_6, %c0_7] : memref<32x32xf32, #tpu.memory_space<vmem>>, vector<32x32xf32>
    %cst_8 = arith.constant dense<0.000000e+00> : vector<8x32xf32>
    %9 = tpu.matmul %7, %8, %cst_8 {dimension_numbers = #tpu.dot_dimension_numbers<[1], [0], [0], [1], [0, 0, 1, 1], [], []>} : vector<8x32xf32>, vector<32x32xf32>, vector<8x32xf32> -> vector<8x32xf32>
    %c0_9 = arith.constant 0 : index
    %c0_10 = arith.constant 0 : index
    %10 = vector.load %arg5[%c0_9, %c0_10] : memref<1x32xf32, #tpu.memory_space<vmem>>, vector<1x32xf32>
    %11 = vector.broadcast %10 : vector<1x32xf32> to vector<8x32xf32>
    %12 = arith.addf %9, %11 : vector<8x32xf32>
    %cst_11 = arith.constant 0.000000e+00 : f32
    %13 = vector.broadcast %cst_11 : f32 to vector<8x32xf32>
    %14 = arith.maximumf %12, %13 : vector<8x32xf32>
    %c0_12 = arith.constant 0 : index
    %c0_13 = arith.constant 0 : index
    %15 = vector.load %arg6[%c0_12, %c0_13] : memref<32x128xf32, #tpu.memory_space<vmem>>, vector<32x128xf32>
    %cst_14 = arith.constant dense<0.000000e+00> : vector<8x128xf32>
    %16 = tpu.matmul %14, %15, %cst_14 {dimension_numbers = #tpu.dot_dimension_numbers<[1], [0], [0], [1], [0, 0, 1, 1], [], []>} : vector<8x32xf32>, vector<32x128xf32>, vector<8x128xf32> -> vector<8x128xf32>
    %c0_15 = arith.constant 0 : index
    %c0_16 = arith.constant 0 : index
    %17 = vector.load %arg7[%c0_15, %c0_16] : memref<1x128xf32, #tpu.memory_space<vmem>>, vector<1x128xf32>
    %18 = vector.broadcast %17 : vector<1x128xf32> to vector<8x128xf32>
    %19 = arith.addf %16, %18 : vector<8x128xf32>
    %20 = tpu.iota {dimensions = array<i32: 1>} : vector<8x128xi32>
    %c10_i32 = arith.constant 10 : i32
    %21 = vector.broadcast %c10_i32 : i32 to vector<8x128xi32>
    %22 = arith.cmpi slt, %20, %21 : vector<8x128xi32>
    %cst_17 = arith.constant 0xFF800000 : f32
    %23 = vector.broadcast %cst_17 : f32 to vector<8x128xf32>
    %24 = arith.select %22, %19, %23 : vector<8x128xi1>, vector<8x128xf32>
    %cst_18 = arith.constant dense<0xFF800000> : vector<8xf32>
    %25 = vector.multi_reduction <maximumf>, %24, %cst_18 [1] : vector<8x128xf32> to vector<8xf32>
    %26 = vector.shape_cast %25 : vector<8xf32> to vector<8x1xf32>
    %27 = vector.broadcast %26 : vector<8x1xf32> to vector<8x128xf32>
    %28 = arith.subf %24, %27 : vector<8x128xf32>
    %29 = math.exp %28 : vector<8x128xf32>
    %cst_19 = arith.constant dense<0.000000e+00> : vector<8xf32>
    %30 = vector.multi_reduction <add>, %29, %cst_19 [1] : vector<8x128xf32> to vector<8xf32>
    %31 = vector.shape_cast %30 : vector<8xf32> to vector<8x1xf32>
    %32 = math.log %31 : vector<8x1xf32>
    %33 = vector.broadcast %32 : vector<8x1xf32> to vector<8x128xf32>
    %34 = arith.subf %28, %33 : vector<8x128xf32>
    %c0_20 = arith.constant 0 : index
    %c0_21 = arith.constant 0 : index
    %35 = vector.load %arg8[%c0_20, %c0_21] : memref<8x128xf32, #tpu.memory_space<vmem>>, vector<8x128xf32>
    tpu.vector_store %arg8[%c0_20, %c0_21], %34 {strides = array<i32>} : memref<8x128xf32, #tpu.memory_space<vmem>>, vector<8x128xf32>,
    return
  }
  func.func @transform_0(%arg0: i32) -> (i32, i32) {
    %c0_i32 = arith.constant 0 : i32
    %c0_i32_0 = arith.constant 0 : i32
    return %arg0, %c0_i32 : i32, i32
  }
  func.func @transform_1(%arg0: i32) -> (i32, i32) {
    %c0_i32 = arith.constant 0 : i32
    %c0_i32_0 = arith.constant 0 : i32
    %c0_i32_1 = arith.constant 0 : i32
    return %c0_i32, %c0_i32_0 : i32, i32
  }
  func.func @transform_2(%arg0: i32) -> (i32, i32) {
    %c0_i32 = arith.constant 0 : i32
    %c0_i32_0 = arith.constant 0 : i32
    %c0_i32_1 = arith.constant 0 : i32
    return %c0_i32, %c0_i32_0 : i32, i32
  }
  func.func @transform_3(%arg0: i32) -> (i32, i32) {
    %c0_i32 = arith.constant 0 : i32
    %c0_i32_0 = arith.constant 0 : i32
    %c0_i32_1 = arith.constant 0 : i32
    return %c0_i32, %c0_i32_0 : i32, i32
  }
  func.func @transform_4(%arg0: i32) -> (i32, i32) {
    %c0_i32 = arith.constant 0 : i32
    %c0_i32_0 = arith.constant 0 : i32
    %c0_i32_1 = arith.constant 0 : i32
    return %c0_i32, %c0_i32_0 : i32, i32
  }
  func.func @transform_5(%arg0: i32) -> (i32, i32) {
    %c0_i32 = arith.constant 0 : i32
    %c0_i32_0 = arith.constant 0 : i32
    %c0_i32_1 = arith.constant 0 : i32
    return %c0_i32, %c0_i32_0 : i32, i32
  }
  func.func @transform_6(%arg0: i32) -> (i32, i32) {
    %c0_i32 = arith.constant 0 : i32
    %c0_i32_0 = arith.constant 0 : i32
    %c0_i32_1 = arith.constant 0 : i32
    return %c0_i32, %c0_i32_0 : i32, i32
  }
  func.func @transform_7(%arg0: i32) -> (i32, i32) {
    %c0_i32 = arith.constant 0 : i32
    %c0_i32_0 = arith.constant 0 : i32
    return %arg0, %c0_i32 : i32, i32
  }
}

module attributes {stable_mosaic.version = 11 : i64} {
  func.func @mlp_kernel(%arg0: i32, %arg1: memref<8x784xf32, #tpu.memory_space<vmem>>, %arg2: memref<784x32xf32, #tpu.memory_space<vmem>>, %arg3: memref<1x32xf32, #tpu.memory_space<vmem>>, %arg4: memref<32x32xf32, #tpu.memory_space<vmem>>, %arg5: memref<1x32xf32, #tpu.memory_space<vmem>>, %arg6: memref<32x128xf32, #tpu.memory_space<vmem>>, %arg7: memref<1x128xf32, #tpu.memory_space<vmem>>, %arg8: memref<8x128xf32, #tpu.memory_space<vmem>>) attributes {dimension_semantics = [#tpu.dimension_semantics<parallel>], iteration_bounds = array<i64: 1>, scalar_prefetch = 0 : i64, scratch_operands = 0 : i64, tpu.core_type = #tpu.core_type<tc>, window_params = [{transform_indices = @transform_0, window_bounds = array<i64: 8, 784>}, {pipeline_mode = #tpu.pipeline_mode<synchronous>, transform_indices = @transform_1, window_bounds = array<i64: 784, 32>}, {pipeline_mode = #tpu.pipeline_mode<synchronous>, transform_indices = @transform_2, window_bounds = array<i64: 1, 32>}, {pipeline_mode = #tpu.pipeline_mode<synchronous>, transform_indices = @transform_3, window_bounds = array<i64: 32, 32>}, {pipeline_mode = #tpu.pipeline_mode<synchronous>, transform_indices = @transform_4, window_bounds = array<i64: 1, 32>}, {pipeline_mode = #tpu.pipeline_mode<synchronous>, transform_indices = @transform_5, window_bounds = array<i64: 32, 128>}, {pipeline_mode = #tpu.pipeline_mode<synchronous>, transform_indices = @transform_6, window_bounds = array<i64: 1, 128>}, {transform_indices = @transform_7, window_bounds = array<i64: 8, 128>}]} {
    %c0 = arith.constant 0 : index
    %c0_0 = arith.constant 0 : index
    %0 = vector.load %arg1[%c0, %c0_0] : memref<8x784xf32, #tpu.memory_space<vmem>>, vector<8x784xf32>
    %c0_1 = arith.constant 0 : index
    %c0_2 = arith.constant 0 : index
    %1 = vector.load %arg2[%c0_1, %c0_2] : memref<784x32xf32, #tpu.memory_space<vmem>>, vector<784x32xf32>
    %cst = arith.constant dense<0.000000e+00> : vector<8x32xf32>
    %2 = tpu.matmul %0, %1, %cst {dimension_numbers = #tpu.dot_dimension_numbers<[1], [0], [0], [1], [0, 0, 1, 1], [], []>} : vector<8x784xf32>, vector<784x32xf32>, vector<8x32xf32> -> vector<8x32xf32>
    %c0_3 = arith.constant 0 : index
    %c0_4 = arith.constant 0 : index
    %3 = vector.load %arg3[%c0_3, %c0_4] : memref<1x32xf32, #tpu.memory_space<vmem>>, vector<1x32xf32>
    %4 = vector.broadcast %3 : vector<1x32xf32> to vector<8x32xf32>
    %5 = arith.addf %2, %4 : vector<8x32xf32>
    %cst_5 = arith.constant 0.000000e+00 : f32
    %6 = vector.broadcast %cst_5 : f32 to vector<8x32xf32>
    %7 = arith.maximumf %5, %6 : vector<8x32xf32>
    %c0_6 = arith.constant 0 : index
    %c0_7 = arith.constant 0 : index
    %8 = vector.load %arg4[%c0_6, %c0_7] : memref<32x32xf32, #tpu.memory_space<vmem>>, vector<32x32xf32>
    %cst_8 = arith.constant dense<0.000000e+00> : vector<8x32xf32>
    %9 = tpu.matmul %7, %8, %cst_8 {dimension_numbers = #tpu.dot_dimension_numbers<[1], [0], [0], [1], [0, 0, 1, 1], [], []>} : vector<8x32xf32>, vector<32x32xf32>, vector<8x32xf32> -> vector<8x32xf32>
    %c0_9 = arith.constant 0 : index
    %c0_10 = arith.constant 0 : index
    %10 = vector.load %arg5[%c0_9, %c0_10] : memref<1x32xf32, #tpu.memory_space<vmem>>, vector<1x32xf32>
    %11 = vector.broadcast %10 : vector<1x32xf32> to vector<8x32xf32>
    %12 = arith.addf %9, %11 : vector<8x32xf32>
    %cst_11 = arith.constant 0.000000e+00 : f32
    %13 = vector.broadcast %cst_11 : f32 to vector<8x32xf32>
    %14 = arith.maximumf %12, %13 : vector<8x32xf32>
    %c0_12 = arith.constant 0 : index
    %c0_13 = arith.constant 0 : index
    %15 = vector.load %arg6[%c0_12, %c0_13] : memref<32x128xf32, #tpu.memory_space<vmem>>, vector<32x128xf32>
    %cst_14 = arith.constant dense<0.000000e+00> : vector<8x128xf32>
    %16 = tpu.matmul %14, %15, %cst_14 {dimension_numbers = #tpu.dot_dimension_numbers<[1], [0], [0], [1], [0, 0, 1, 1], [], []>} : vector<8x32xf32>, vector<32x128xf32>, vector<8x128xf32> -> vector<8x128xf32>
    %c0_15 = arith.constant 0 : index
    %c0_16 = arith.constant 0 : index
    %17 = vector.load %arg7[%c0_15, %c0_16] : memref<1x128xf32, #tpu.memory_space<vmem>>, vector<1x128xf32>
    %18 = vector.broadcast %17 : vector<1x128xf32> to vector<8x128xf32>
    %19 = arith.addf %16, %18 : vector<8x128xf32>
    %20 = tpu.iota {dimensions = array<i32: 1>} : vector<8x128xi32>
    %c10_i32 = arith.constant 10 : i32
    %21 = vector.broadcast %c10_i32 : i32 to vector<8x128xi32>
    %22 = arith.cmpi slt, %20, %21 : vector<8x128xi32>
    %cst_17 = arith.constant 0xFF800000 : f32
    %23 = vector.broadcast %cst_17 : f32 to vector<8x128xf32>
    %24 = arith.select %22, %19, %23 : vector<8x128xi1>, vector<8x128xf32>
    %cst_18 = arith.constant dense<0xFF800000> : vector<8xf32>
    %25 = vector.multi_reduction <maximumf>, %24, %cst_18 [1] : vector<8x128xf32> to vector<8xf32>
    %26 = vector.shape_cast %25 : vector<8xf32> to vector<8x1xf32>
    %27 = vector.broadcast %26 : vector<8x1xf32> to vector<8x128xf32>
    %28 = arith.subf %24, %27 : vector<8x128xf32>
    %29 = math.exp %28 : vector<8x128xf32>
    %cst_19 = arith.constant dense<0.000000e+00> : vector<8xf32>
    %30 = vector.multi_reduction <add>, %29, %cst_19 [1] : vector<8x128xf32> to vector<8xf32>
    %31 = vector.shape_cast %30 : vector<8xf32> to vector<8x1xf32>
    %32 = math.log %31 : vector<8x1xf32>
    %33 = vector.broadcast %32 : vector<8x1xf32> to vector<8x128xf32>
    %34 = arith.subf %28, %33 : vector<8x128xf32>
    %c0_20 = arith.constant 0 : index
    %c0_21 = arith.constant 0 : index
    %35 = vector.load %arg8[%c0_20, %c0_21] : memref<8x128xf32, #tpu.memory_space<vmem>>, vector<8x128xf32>
    tpu.vector_store %arg8[%c0_20, %c0_21], %34 {strides = array<i32>} : memref<8x128xf32, #tpu.memory_space<vmem>>, vector<8x128xf32>,
    return
  }
  func.func @transform_0(%arg0: i32) -> (i32, i32) {
    %c0_i32 = arith.constant 0 : i32
    %c0_i32_0 = arith.constant 0 : i32
    return %arg0, %c0_i32 : i32, i32
  }
  func.func @transform_1(%arg0: i32) -> (i32, i32) {
    %c0_i32 = arith.constant 0 : i32
    %c0_i32_0 = arith.constant 0 : i32
    %c0_i32_1 = arith.constant 0 : i32
    return %c0_i32, %c0_i32_0 : i32, i32
  }
  func.func @transform_2(%arg0: i32) -> (i32, i32) {
    %c0_i32 = arith.constant 0 : i32
    %c0_i32_0 = arith.constant 0 : i32
    %c0_i32_1 = arith.constant 0 : i32
    return %c0_i32, %c0_i32_0 : i32, i32
  }
  func.func @transform_3(%arg0: i32) -> (i32, i32) {
    %c0_i32 = arith.constant 0 : i32
    %c0_i32_0 = arith.constant 0 : i32
    %c0_i32_1 = arith.constant 0 : i32
    return %c0_i32, %c0_i32_0 : i32, i32
  }
  func.func @transform_4(%arg0: i32) -> (i32, i32) {
    %c0_i32 = arith.constant 0 : i32
    %c0_i32_0 = arith.constant 0 : i32
    %c0_i32_1 = arith.constant 0 : i32
    return %c0_i32, %c0_i32_0 : i32, i32
  }
  func.func @transform_5(%arg0: i32) -> (i32, i32) {
    %c0_i32 = arith.constant 0 : i32
    %c0_i32_0 = arith.constant 0 : i32
    %c0_i32_1 = arith.constant 0 : i32
    return %c0_i32, %c0_i32_0 : i32, i32
  }
  func.func @transform_6(%arg0: i32) -> (i32, i32) {
    %c0_i32 = arith.constant 0 : i32
    %c0_i32_0 = arith.constant 0 : i32
    %c0_i32_1 = arith.constant 0 : i32
    return %c0_i32, %c0_i32_0 : i32, i32
  }
  func.func @transform_7(%arg0: i32) -> (i32, i32) {
    %c0_i32 = arith.constant 0 : i32
    %c0_i32_0 = arith.constant 0 : i32
    return %arg0, %c0_i32 : i32, i32
  }
}

</mosaic_0001>

<bundles_post_ra>
// kernel: tpu_custom_call.1
= control target key start
LH: loop header
LB: loop body
LE: loop exit
PB: predicated region body
PF: predicated region fallthrough
CT: control target
= control target key end

     0   :  { %s1336_s0 = inlined_call_operand.vmem [shape: f32[8,784], index: 0, kind: input, shape index: {}]   ;;  %s1337_s1 = inlined_call_operand.vmem [shape: f32[784,32], index: 1, kind: input, shape index: {}]   ;;  %s1338_s2 = inlined_call_operand.vmem [shape: f32[1,32], index: 2, kind: input, shape index: {}]   ;;  %s1339_s3 = inlined_call_operand.vmem [shape: f32[32,32], index: 3, kind: input, shape index: {}]   ;;  %s1340_s4 = inlined_call_operand.vmem [shape: f32[1,32], index: 4, kind: input, shape index: {}]   ;;  %s1341_s5 = inlined_call_operand.vmem [shape: f32[32,128], index: 5, kind: input, shape index: {}]   ;;  %s1342_s6 = inlined_call_operand.vmem [shape: f32[1,128], index: 6, kind: input, shape index: {}]   ;;  %s1343_s7 = inlined_call_operand.hbm [shape: f32[8,128], index: 7, kind: output, shape index: {}]  }
   0x1   :  { %v50_v0 = vld [vmem:[%s1337_s1 + $0x80] sm:$0xff]  ;;  %v51_v1 = vld [vmem:[%s1337_s1 + $0x88] sm:$0xff]  ;;  %v52_v11 = vld [vmem:[%s1337_s1 + $0x90] sm:$0xff] }
   0x2   :  { %v34_v2 = vld [vmem:[%s1337_s1] sm:$0xff]  ;;  %v776_v3 = vpack.c.bf16 %v51_v1, %v50_v0  ;;  %v35_v4 = vld [vmem:[%s1337_s1 + $0x8] sm:$0xff]  ;;  %v53_v13 = vld [vmem:[%s1337_s1 + $0x98] sm:$0xff] }
   0x3   :  { %v82_v5 = vld [vmem:[%s1337_s1 + $0x180] sm:$0xff]  ;;  %v83_v6 = vld [vmem:[%s1337_s1 + $0x188] sm:$0xff]  ;;  %v778_v7 = vpack.c.bf16 %v35_v4, %v34_v2  ;;  %v36_v14 = vld [vmem:[%s1337_s1 + $0x10] sm:$0xff]  ;;  %v780_v16 = vpack.c.bf16 %v53_v13, %v52_v11 }
   0x4   :  { %v808_v8 = vpack.c.bf16 %v83_v6, %v82_v5  ;;  %v66_v9 = vld [vmem:[%s1337_s1 + $0x100] sm:$0xff]  ;;  %v67_v10 = vld [vmem:[%s1337_s1 + $0x108] sm:$0xff]  ;;  %777 = vmatprep.subr.bf16.mxu0 %v776_v3  ;;  %v37_v15 = vld [vmem:[%s1337_s1 + $0x18] sm:$0xff] }
   0x5   :  { %v810_v12 = vpack.c.bf16 %v67_v10, %v66_v9  ;;  %779 = vmatpush3.bf16.msra.mxu0 %v778_v7  ;;  %v782_v17 = vpack.c.bf16 %v37_v15, %v36_v14  ;;  %v84_v18 = vld [vmem:[%s1337_s1 + $0x190] sm:$0xff]  ;;  %v85_v19 = vld [vmem:[%s1337_s1 + $0x198] sm:$0xff]  ;;  %v54_v23 = vld [vmem:[%s1337_s1 + $0xa0] sm:$0xff] }
   0x6   :  { %809 = vmatprep.subr.bf16.mxu1 %v808_v8  ;;  %v68_v20 = vld [vmem:[%s1337_s1 + $0x110] sm:$0xff]  ;;  %v812_v21 = vpack.c.bf16 %v85_v19, %v84_v18  ;;  %v69_v22 = vld [vmem:[%s1337_s1 + $0x118] sm:$0xff]  ;;  %v55_v24 = vld [vmem:[%s1337_s1 + $0xa8] sm:$0xff]  ;;  %781 = vmatprep.subr.bf16.mxu0 %v780_v16 }
   0x7   :  { %811 = vmatpush3.bf16.msra.mxu1 %v810_v12  ;;  %v814_v25 = vpack.c.bf16 %v69_v22, %v68_v20  ;;  %v784_v26 = vpack.c.bf16 %v55_v24, %v54_v23  ;;  %v38_v27 = vld [vmem:[%s1337_s1 + $0x20] sm:$0xff]  ;;  %v39_v28 = vld [vmem:[%s1337_s1 + $0x28] sm:$0xff]  ;;  %v56_v35 = vld [vmem:[%s1337_s1 + $0xb0] sm:$0xff] }
   0x8   :  { %v86_v29 = vld [vmem:[%s1337_s1 + $0x1a0] sm:$0xff]  ;;  %813 = vmatprep.subr.bf16.mxu1 %v812_v21  ;;  %v87_v30 = vld [vmem:[%s1337_s1 + $0x1a8] sm:$0xff]  ;;  %v786_v33 = vpack.c.bf16 %v39_v28, %v38_v27  ;;  %v57_v36 = vld [vmem:[%s1337_s1 + $0xb8] sm:$0xff] }
   0x9   :  { %v70_v31 = vld [vmem:[%s1337_s1 + $0x120] sm:$0xff]  ;;  %v71_v32 = vld [vmem:[%s1337_s1 + $0x128] sm:$0xff]  ;;  %783 = vmatpush3.bf16.msra.mxu0 %v782_v17  ;;  %v816_v34 = vpack.c.bf16 %v87_v30, %v86_v29  ;;  %v40_v37 = vld [vmem:[%s1337_s1 + $0x30] sm:$0xff]  ;;  %v788_v39 = vpack.c.bf16 %v57_v36, %v56_v35 }
   0xa   :  { %785 = vmatprep.subr.bf16.mxu0 %v784_v26  ;;  %v818_v38 = vpack.c.bf16 %v71_v32, %v70_v31  ;;  %v41_v40 = vld [vmem:[%s1337_s1 + $0x38] sm:$0xff]  ;;  %v88_v41 = vld [vmem:[%s1337_s1 + $0x1b0] sm:$0xff]  ;;  %v58_v46 = vld [vmem:[%s1337_s1 + $0xc0] sm:$0xff] }
   0xb   :  { %815 = vmatpush3.bf16.msra.mxu1 %v814_v25  ;;  %v89_v42 = vld [vmem:[%s1337_s1 + $0x1b8] sm:$0xff]  ;;  %v72_v44 = vld [vmem:[%s1337_s1 + $0x130] sm:$0xff]  ;;  %v59_v47 = vld [vmem:[%s1337_s1 + $0xc8] sm:$0xff]  ;;  %v790_v48 = vpack.c.bf16 %v41_v40, %v40_v37 }
   0xc   :  { %817 = vmatprep.subr.bf16.mxu1 %v816_v34  ;;  %v820_v43 = vpack.c.bf16 %v89_v42, %v88_v41  ;;  %v73_v45 = vld [vmem:[%s1337_s1 + $0x138] sm:$0xff]  ;;  %v90_v49 = vld [vmem:[%s1337_s1 + $0x1c0] sm:$0xff]  ;;  %v91_v50 = vld [vmem:[%s1337_s1 + $0x1c8] sm:$0xff]  ;;  %v792_v52 = vpack.c.bf16 %v59_v47, %v58_v46 }
   0xd   :  { %787 = vmatpush3.bf16.msra.mxu0 %v786_v33  ;;  %v822_v51 = vpack.c.bf16 %v73_v45, %v72_v44  ;;  %v42_v53 = vld [vmem:[%s1337_s1 + $0x40] sm:$0xff]  ;;  %v43_v54 = vld [vmem:[%s1337_s1 + $0x48] sm:$0xff]  ;;  %v824_v56 = vpack.c.bf16 %v91_v50, %v90_v49  ;;  %v60_v58 = vld [vmem:[%s1337_s1 + $0xd0] sm:$0xff]  ;;  %v919_v50 = vmov 0.0|0.0  }
   0xe   :  { %789 = vmatprep.subr.bf16.mxu0 %v788_v39  ;;  %v74_v55 = vld [vmem:[%s1337_s1 + $0x140] sm:$0xff]  ;;  %v75_v57 = vld [vmem:[%s1337_s1 + $0x148] sm:$0xff]  ;;  %v61_v59 = vld [vmem:[%s1337_s1 + $0xd8] sm:$0xff]  ;;  %v794_v62 = vpack.c.bf16 %v43_v54, %v42_v53 }
   0xf   :  { %819 = vmatpush3.bf16.msra.mxu1 %v818_v38  ;;  %v92_v60 = vld [vmem:[%s1337_s1 + $0x1d0] sm:$0xff]  ;;  %v93_v61 = vld [vmem:[%s1337_s1 + $0x1d8] sm:$0xff]  ;;  %v826_v63 = vpack.c.bf16 %v75_v57, %v74_v55  ;;  %v796_v0 = vpack.c.bf16 %v61_v59, %v60_v58  ;;  %v62_v6 = vld [vmem:[%s1337_s1 + $0xe0] sm:$0xff] }
  0x10   :  { %821 = vmatprep.subr.bf16.mxu1 %v820_v43  ;;  %v44_v1 = vld [vmem:[%s1337_s1 + $0x50] sm:$0xff]  ;;  %v45_v2 = vld [vmem:[%s1337_s1 + $0x58] sm:$0xff]  ;;  %v828_v4 = vpack.c.bf16 %v93_v61, %v92_v60  ;;  %v63_v7 = vld [vmem:[%s1337_s1 + $0xe8] sm:$0xff] }
  0x11   :  { %791 = vmatpush3.bf16.msra.mxu0 %v790_v48  ;;  %v76_v3 = vld [vmem:[%s1337_s1 + $0x150] sm:$0xff]  ;;  %v77_v5 = vld [vmem:[%s1337_s1 + $0x158] sm:$0xff]  ;;  %v94_v8 = vld [vmem:[%s1337_s1 + $0x1e0] sm:$0xff]  ;;  %v798_v10 = vpack.c.bf16 %v45_v2, %v44_v1  ;;  %v800_v14 = vpack.c.bf16 %v63_v7, %v62_v6 }
  0x12   :  { %793 = vmatprep.subr.bf16.mxu0 %v792_v52  ;;  %v95_v9 = vld [vmem:[%s1337_s1 + $0x1e8] sm:$0xff]  ;;  %v46_v11 = vld [vmem:[%s1337_s1 + $0x60] sm:$0xff]  ;;  %v830_v13 = vpack.c.bf16 %v77_v5, %v76_v3  ;;  %v64_v19 = vld [vmem:[%s1337_s1 + $0xf0] sm:$0xff] }
  0x13   :  { %823 = vmatpush3.bf16.msra.mxu1 %v822_v51  ;;  %v28_v12 = vld [vmem:[%s1336_s0 + $0x8] sm:$0xff]  ;;  %v78_v16 = vld [vmem:[%s1337_s1 + $0x160] sm:$0xff]  ;;  %v832_v18 = vpack.c.bf16 %v95_v9, %v94_v8  ;;  %v65_v20 = vld [vmem:[%s1337_s1 + $0xf8] sm:$0xff] }
  0x14   :  { %825 = vmatprep.subr.bf16.mxu1 %v824_v56  ;;  %v47_v15 = vld [vmem:[%s1337_s1 + $0x68] sm:$0xff]  ;;  %207 = vmatprep.mubr.f32.mxu0 %v28_v12  ;;  %v30_v21 = vld [vmem:[%s1336_s0 + $0x18] sm:$0xff]  ;;  %v96_v22 = vld [vmem:[%s1337_s1 + $0x1f0] sm:$0xff]  ;;  %v804_v26 = vpack.c.bf16 %v65_v20, %v64_v19 }
  0x15   :  { %795 = vmatpush3.bf16.msra.mxu0 %v794_v62  ;;  %v79_v17 = vld [vmem:[%s1337_s1 + $0x168] sm:$0xff]  ;;  %v97_v23 = vld [vmem:[%s1337_s1 + $0x1f8] sm:$0xff]  ;;  %277 = vmatprep.mubr.f32.mxu1 %v30_v21  ;;  %v802_v24 = vpack.c.bf16 %v47_v15, %v46_v11  ;;  %v48_v27 = vld [vmem:[%s1337_s1 + $0x70] sm:$0xff] }
  0x16   :  { %797 = vmatprep.subr.bf16.mxu0 %v796_v0  ;;  %v834_v25 = vpack.c.bf16 %v79_v17, %v78_v16  ;;  %v49_v28 = vld [vmem:[%s1337_s1 + $0x78] sm:$0xff]  ;;  %v80_v29 = vld [vmem:[%s1337_s1 + $0x170] sm:$0xff]  ;;  %v836_v30 = vpack.c.bf16 %v97_v23, %v96_v22  ;;  %v114_v32 = vld [vmem:[%s1337_s1 + $0x280] sm:$0xff] }
  0x17   :  { %827 = vmatpush3.bf16.msra.mxu1 %v826_v63  ;;  %v81_v31 = vld [vmem:[%s1337_s1 + $0x178] sm:$0xff]  ;;  %v115_v33 = vld [vmem:[%s1337_s1 + $0x288] sm:$0xff]  ;;  %v806_v34 = vpack.c.bf16 %v49_v28, %v48_v27  ;;  %v98_v37 = vld [vmem:[%s1337_s1 + $0x200] sm:$0xff] }
  0x18   :  { %829 = vmatprep.subr.bf16.mxu1 %v828_v4  ;;  %v838_v35 = vpack.c.bf16 %v81_v31, %v80_v29  ;;  %v840_v36 = vpack.c.bf16 %v115_v33, %v114_v32  ;;  %v99_v38 = vld [vmem:[%s1337_s1 + $0x208] sm:$0xff]  ;;  %v116_v39 = vld [vmem:[%s1337_s1 + $0x290] sm:$0xff]  ;;  %v117_v40 = vld [vmem:[%s1337_s1 + $0x298] sm:$0xff] }
  0x19   :  { %799 = vmatpush3.bf16.msra.mxu0 %v798_v10  ;;  %v27_v41 = vld [vmem:[%s1336_s0] sm:$0xff]  ;;  %v842_v42 = vpack.c.bf16 %v99_v38, %v98_v37  ;;  %v29_v43 = vld [vmem:[%s1336_s0 + $0x10] sm:$0xff]  ;;  %v844_v45 = vpack.c.bf16 %v117_v40, %v116_v39  ;;  %v101_v46 = vld [vmem:[%s1337_s1 + $0x218] sm:$0xff] }
  0x1a   :  { %801 = vmatprep.subr.bf16.mxu0 %v800_v14  ;;  %v100_v44 = vld [vmem:[%s1337_s1 + $0x210] sm:$0xff]  ;;  %v118_v47 = vld [vmem:[%s1337_s1 + $0x2a0] sm:$0xff]  ;;  %v119_v48 = vld [vmem:[%s1337_s1 + $0x2a8] sm:$0xff] }
  0x1b   :  { %831 = vmatpush3.bf16.msra.mxu1 %v830_v13  ;;  %v32_v49 = vld [vmem:[%s1336_s0 + $0x28] sm:$0xff]  ;;  %v130_v51 = vld [vmem:[%s1337_s1 + $0x300] sm:$0xff] }
  0x1c   :  { %833 = vmatprep.subr.bf16.mxu1 %v832_v18  ;;  %v131_v52 = vld [vmem:[%s1337_s1 + $0x308] sm:$0xff] }
  0x1d   :  { %803 = vmatpush3.bf16.msra.mxu0 %v802_v24  ;;  %v873_v53 = vpack.c.bf16 %v131_v52, %v130_v51 }
  0x1e   :  { %805 = vmatprep.subr.bf16.mxu0 %v804_v26 }
  0x1f   :  { %835 = vmatpush3.bf16.msra.mxu1 %v834_v25 }
  0x20   :  { %837 = vmatprep.subr.bf16.mxu1 %v836_v30 }
  0x21   :  { %807 = vmatpush3.bf16.msra.mxu0 %v806_v34 }
  0x22   :  { %841 = vmatprep.subr.bf16.mxu0 %v840_v36 }
  0x23   :  { %839 = vmatpush3.bf16.msra.mxu1 %v838_v35 }
  0x24   :  { %872 = vmatprep.subr.bf16.mxu1 %v919_v50  ;;  %208 = vmatmul.mubr.f32.vlgmr.msra.gmra.mrb[0].mxu0 %v27_v41 }
  0x25   :  { %12 = vsyncpa [#allocation3], 0  ;;  %843 = vmatpush3.bf16.msra.mxu0 %v842_v42  ;;  %v846_v54 = vpack.c.bf16 %v101_v46, %v100_v44  ;;  %v848_v55 = vpack.c.bf16 %v119_v48, %v118_v47  ;;  %v102_v56 = vld [vmem:[%s1337_s1 + $0x220] sm:$0xff]  ;;  %v103_v57 = vld [vmem:[%s1337_s1 + $0x228] sm:$0xff]  ;;  %347 = vmatprep.mubr.f32.mxu0 %v32_v49  ;;  %vm920_vm0 = vmmov 0   ;;  %v921_v60 = vmov 0.0  }
  0x26   :  { %278 = vmatmul.mubr.f32.vlgmr.msra.gmra.mrb[0].mxu1 %v29_v43  ;;  %845 = vmatprep.subr.bf16.mxu0 %v844_v45  ;;  %v120_v58 = vld [vmem:[%s1337_s1 + $0x2b0] sm:$0xff]  ;;  %v121_v59 = vld [vmem:[%s1337_s1 + $0x2b8] sm:$0xff]  ;;  %vm139_vm1 = vcmask 130048   ;;  %v850_v62 = vpack.c.bf16 %v103_v57, %v102_v56  ;;  %v122_v2 = vld [vmem:[%s1337_s1 + $0x2c0] sm:$0xff]  ;;  %vm435_vm2 = vcmask 261120  }
  0x27   :  { %874 = vmatpush3.bf16.msra.mxu1 %v873_v53  ;;  %751 = vmatprep.mubr.msk.f32.mxu1 %vm920_vm0, %v921_v60  ;;  %v33_v61 = vld [vmem:[%s1336_s0 + $0x30] sm:$0xff]  ;;  %v852_v63 = vpack.c.bf16 %v121_v59, %v120_v58  ;;  %v105_v1 = vld [vmem:[%s1337_s1 + $0x238] sm:$0xff]  ;;  %v123_v3 = vld [vmem:[%s1337_s1 + $0x2c8] sm:$0xff] }
  0x28   :  { %875 = vmatprep.subr.bf16.mxu1 %v919_v50  ;;  %v104_v0 = vld [vmem:[%s1337_s1 + $0x230] sm:$0xff]  ;;  %v856_v5 = vpack.c.bf16 %v123_v3, %v122_v2  ;;  %v106_v6 = vld [vmem:[%s1337_s1 + $0x240] sm:$0xff]  ;;  %v107_v7 = vld [vmem:[%s1337_s1 + $0x248] sm:$0xff] }
  0x29   :  { %847 = vmatpush3.bf16.msra.mxu0 %v846_v54  ;;  %v854_v4 = vpack.c.bf16 %v105_v1, %v104_v0  ;;  %v124_v8 = vld [vmem:[%s1337_s1 + $0x2d0] sm:$0xff]  ;;  %v125_v9 = vld [vmem:[%s1337_s1 + $0x2d8] sm:$0xff]  ;;  %v858_v10 = vpack.c.bf16 %v107_v7, %v106_v6  ;;  %v126_v14 = vld [vmem:[%s1337_s1 + $0x2e0] sm:$0xff] }
  0x2a   :  { %849 = vmatprep.subr.bf16.mxu0 %v848_v55  ;;  %752 = vmatmul.mubr.msk.f32.vlgmr.msra.gmra.mrb[2].mxu1 %vm139_vm1, %v33_v61  ;;  %v860_v11 = vpack.c.bf16 %v125_v9, %v124_v8  ;;  %v108_v12 = vld [vmem:[%s1337_s1 + $0x250] sm:$0xff]  ;;  %v109_v13 = vld [vmem:[%s1337_s1 + $0x258] sm:$0xff]  ;;  %v127_v15 = vld [vmem:[%s1337_s1 + $0x2e8] sm:$0xff] }
  0x2b   :  { %762 = vmatprep.mubr.msk.f32.mxu1 %vm920_vm0, %v921_v60  ;;  %v862_v16 = vpack.c.bf16 %v109_v13, %v108_v12  ;;  %v864_v17 = vpack.c.bf16 %v127_v15, %v126_v14  ;;  %v110_v18 = vld [vmem:[%s1337_s1 + $0x260] sm:$0xff]  ;;  %v111_v19 = vld [vmem:[%s1337_s1 + $0x268] sm:$0xff]  ;;  %v128_v20 = vld [vmem:[%s1337_s1 + $0x2f0] sm:$0xff] }
  0x2c   :  { %v129_v21 = vld [vmem:[%s1337_s1 + $0x2f8] sm:$0xff]  ;;  %v866_v22 = vpack.c.bf16 %v111_v19, %v110_v18  ;;  %v112_v24 = vld [vmem:[%s1337_s1 + $0x270] sm:$0xff]  ;;  %v31_v27 = vld [vmem:[%s1336_s0 + $0x20] sm:$0xff] }
  0x2d   :  { %851 = vmatpush3.bf16.msra.mxu0 %v850_v62  ;;  %v868_v23 = vpack.c.bf16 %v129_v21, %v128_v20  ;;  %v113_v25 = vld [vmem:[%s1337_s1 + $0x278] sm:$0xff]  ;;  %v424_v28 = vld [vmem:[%s1339_s3] sm:$0xff]  ;;  %v425_v29 = vld [vmem:[%s1339_s3 + $0x8] sm:$0xff] }
  0x2e   :  { %853 = vmatprep.subr.bf16.mxu0 %v852_v63  ;;  %v870_v26 = vpack.c.bf16 %v113_v25, %v112_v24  ;;  %v876_v30 = vpack.c.bf16 %v425_v29, %v424_v28  ;;  %v426_v31 = vld [vmem:[%s1339_s3 + $0x10] sm:$0xff]  ;;  %v427_v32 = vld [vmem:[%s1339_s3 + $0x18] sm:$0xff]  ;;  %v623_v35 = vld [vmem:[%s1338_s2] ss:$0 sm:$0xff] }
  0x2f   :  { %v879_v33 = vpack.c.bf16 %v427_v32, %v426_v31  ;;  %v510_v49 = vld [vmem:[%s1341_s5] sm:$0xff]  ;;  %v511_v51 = vld [vmem:[%s1341_s5 + $0x8] sm:$0xff]  ;;  %v512_v55 = vld [vmem:[%s1341_s5 + $0x10] sm:$0xff] }
  0x30   :  { %877 = vmatpush3.bf16.msra.mxu1 %v876_v30  ;;  %v882_v53 = vpack.c.bf16 %v511_v51, %v510_v49  ;;  %v513_v56 = vld [vmem:[%s1341_s5 + $0x18] sm:$0xff]  ;;  %v625_v58 = vld [vmem:[%s1340_s4] ss:$0 sm:$0xff]  ;;  %s922_s4 = smov [#allocation2]  }
  0x31   :  { %855 = vmatpush3.bf16.msra.mxu0 %v854_v4  ;;  %878 = vmatprep.subr.bf16.mxu1 %v919_v50  ;;  %v885_v57 = vpack.c.bf16 %v513_v56, %v512_v55  ;;  %v627_v0 = vld [vmem:[%s1342_s6] ss:$0 sm:$0xff]  ;;  %s615_s5 = sshll.u32 %s922_s4, 4  ;;  %s616_s5 = int_to_ptr.vmem [resolvable:$true] %s615_s5 }
  0x32   :  { %857 = vmatprep.subr.bf16.mxu0 %v856_v5  ;;  %s895_s6 = scalar_lea.vmem %s616_s5, 128  ;;  %p900_p1 = scmp.lt.s32.totalorder %s616_s5, %s616_s5 }
  0x33   :  { %p896_p0 = scmp.ne.s32.totalorder %s616_s5, %s895_s6  ;;  %p901_p2 = scmp.lt.s32.totalorder %s895_s6, %s895_s6 }
  0x34   :  { %880 = vmatpush3.bf16.msra.mxu1 %v879_v33 }
  0x35   :  { %859 = vmatpush3.bf16.msra.mxu0 %v858_v10  ;;  %881 = vmatprep.subr.bf16.mxu1 %v919_v50  ;;  %p902_p3 = por %p901_p2, %p900_p1 }
  0x36   :  { %861 = vmatprep.subr.bf16.mxu0 %v860_v11 }
  0x37   :  { %p903_p4 = pnand %p902_p3, %p896_p0 }
  0x39   :  { %863 = vmatpush3.bf16.msra.mxu0 %v862_v16 }
  0x3a   :  { %865 = vmatprep.subr.bf16.mxu0 %v864_v17 }
  0x3d   :  { %867 = vmatpush3.bf16.msra.mxu0 %v866_v22 }
  0x3e   :  { %869 = vmatprep.subr.bf16.mxu0 %v868_v23 }
  0x41   :  { %871 = vmatpush3.bf16.msra.mxu0 %v870_v26 }
  0x44   :  { %348 = vmatmul.mubr.f32.vlgmr.msra.gmra.mrb[2].mxu0 %v31_v27 }
  0xf7   :  { %v661_v34 = vpop.f32.mrb[0].mxu0 }
  0xf8   :  { %v662_v36 = vpop.f32.mrb[1].mxu0 }
  0xf9   :  { %v696_v37 = vpop.f32.mrb[0].mxu1  ;;  %v663_v38 = vadd.f32 %v662_v36, %v661_v34 }
  0xfa   :  { %v697_v39 = vpop.f32.mrb[1].mxu1 }
  0xfb   :  { %v698_v40 = vadd.f32 %v697_v39, %v696_v37  ;;  %v210_v41 = vadd.f32 %v663_v38, %v623_v35 }
  0xfd   :  { %v280_v42 = vadd.f32 %v698_v40, %v210_v41  ;;  %v419_v43 = vpop.f32.mrb[2].mxu1 }
  0xfe   :  { %v753_v44 = vpop.f32.mrb[3].mxu1 }
 0x117   :  { %v731_v45 = vpop.f32.mrb[2].mxu0 }
 0x118   :  { %v732_v46 = vpop.f32.mrb[3].mxu0 }
 0x119   :  { %v733_v47 = vadd.f32 %v732_v46, %v731_v45 }
 0x11b   :  { %v350_v48 = vadd.f32 %v733_v47, %v280_v42 }
 0x11d   :  { %v420_v52 = vadd.f32 %v419_v43, %v350_v48 }
 0x11f   :  { %v423_v54 = vmax.f32 %v420_v52, 0.0 }
 0x121   :  { %763 = vmatmul.mubr.msk.f32.vlgmr.msra.gmra.mrb[4].mxu1 %vm435_vm2, %v423_v54 }
 0x122   :  { %883 = vmatpush3.bf16.msra.mxu1 %v882_v53  ;;  %773 = vmatprep.mubr.msk.f32.mxu1 %vm920_vm0, %v921_v60 }
 0x123   :  { %884 = vmatprep.subr.bf16.mxu1 %v919_v50  ;;  %v594_v50 = vlaneseq }
 0x125   :  { %v595_v63 = vand.u32 127, %v594_v50 }
 0x126   :  { %886 = vmatpush3.bf16.msra.mxu1 %v885_v57 }
 0x127   :  { %vm596_vm3 = vcmp.lt.s32.totalorder %v595_v63, 10 }
 0x1f4   :  { %v505_v59 = vpop.f32.mrb[4].mxu1 }
 0x1f5   :  { %v506_v61 = vadd.f32 %v625_v58, %v505_v59  ;;  %v764_v62 = vpop.f32.mrb[5].mxu1 }
 0x1f7   :  { %v509_v60 = vmax.f32 %v506_v61, 0.0 }
 0x1f9   :  { %774 = vmatmul.mubr.msk.f32.vlgmr.msra.gmra.mrb[6].mxu1 %vm435_vm2, %v509_v60 }
 0x2cc   :  { %v590_v1 = vpop.f32.mrb[6].mxu1 }
 0x2cd   :  { %v591_v2 = vadd.f32 %v627_v0, %v590_v1  ;;  %v775_v3 = vpop.f32.mrb[7].mxu1 }
 0x2cf   :  { %v597_v4 = vsel %vm596_vm3, %v591_v2, -inf }
 0x2d0   :  { %598 = vmax.xlane.f32.xlu0 %v597_v4 }
 0x35d   :  { %v599_v5 = vpop.xlane.xlu0 %598 }
 0x35e   :  { %v600_v6 = vsub.f32 %v597_v4, %v599_v5 }
 0x360   :  { %v601_v7 = vmul.f32 1.442695, %v600_v6 }
 0x362   :  { %891 = vpow2.f32 %v601_v7 }
 0x36c   :  { %v892_v8 = vpop.eup %891 }
 0x36d   :  { %603 = vadd.xlane.f32.xlu0 %v892_v8 }
 0x3fa   :  { %v604_v9 = vpop.xlane.xlu0 %603 }
 0x3fb   :  { %893 = vlog2.f32 %v604_v9 }
 0x405   :  { %v894_v10 = vpop.eup %893 }
 0x406   :  { %v606_v11 = vmul.f32 0.6931472, %v894_v10 }
 0x408   :  { %v607_v12 = vsub.f32 %v600_v6, %v606_v11 }
 0x40a   :  { %608 = vst [vmem:[#allocation2] sm:$0xff] %v607_v12 }
 0x40b   :  { %906 = shalt.err (!%p903_p4)
}
 0x40c   :  { %s907_s24 = scalar_lea.hbm %s1343_s7, 128 }
 0x40d   :  { %p908_p5 = scmp.ne.s32.totalorder %s1343_s7, %s907_s24  ;;  %p911_p6 = scmp.lt.u32.totalorder %s907_s24, %s1343_s7 }
 0x40f   :  { %p913_p7 = pnand %p911_p6, %p908_p5 }
 0x411   :  { %916 = shalt.err (!%p913_p7)
}
 0x412   :  { %618 = dma.vmem_to_hbm [thread:$0]  %s616_s5, 128, %s1343_s7, [#allocation3]  }
 0x413   :  { %917 = dma.done.wait [#allocation3], 128  }
 0x414   :  { %918 = vsyncadd [#allocation3], 4294967168 }
 0x415   :  { %622 = vsyncpa [#allocation3], 1 }

// kernel: tpu_custom_call.1
= control target key start
LH: loop header
LB: loop body
LE: loop exit
PB: predicated region body
PF: predicated region fallthrough
CT: control target
= control target key end

     0   :  { %s1336_s0 = inlined_call_operand.vmem [shape: f32[8,784], index: 0, kind: input, shape index: {}]   ;;  %s1337_s1 = inlined_call_operand.vmem [shape: f32[784,32], index: 1, kind: input, shape index: {}]   ;;  %s1338_s2 = inlined_call_operand.vmem [shape: f32[1,32], index: 2, kind: input, shape index: {}]   ;;  %s1339_s3 = inlined_call_operand.vmem [shape: f32[32,32], index: 3, kind: input, shape index: {}]   ;;  %s1340_s4 = inlined_call_operand.vmem [shape: f32[1,32], index: 4, kind: input, shape index: {}]   ;;  %s1341_s5 = inlined_call_operand.vmem [shape: f32[32,128], index: 5, kind: input, shape index: {}]   ;;  %s1342_s6 = inlined_call_operand.vmem [shape: f32[1,128], index: 6, kind: input, shape index: {}]   ;;  %s1343_s7 = inlined_call_operand.hbm [shape: f32[8,128], index: 7, kind: output, shape index: {}]  }
   0x1   :  { %v50_v0 = vld [vmem:[%s1337_s1 + $0x80] sm:$0xff]  ;;  %v51_v1 = vld [vmem:[%s1337_s1 + $0x88] sm:$0xff]  ;;  %v52_v11 = vld [vmem:[%s1337_s1 + $0x90] sm:$0xff] }
   0x2   :  { %v34_v2 = vld [vmem:[%s1337_s1] sm:$0xff]  ;;  %v776_v3 = vpack.c.bf16 %v51_v1, %v50_v0  ;;  %v35_v4 = vld [vmem:[%s1337_s1 + $0x8] sm:$0xff]  ;;  %v53_v13 = vld [vmem:[%s1337_s1 + $0x98] sm:$0xff] }
   0x3   :  { %v82_v5 = vld [vmem:[%s1337_s1 + $0x180] sm:$0xff]  ;;  %v83_v6 = vld [vmem:[%s1337_s1 + $0x188] sm:$0xff]  ;;  %v778_v7 = vpack.c.bf16 %v35_v4, %v34_v2  ;;  %v36_v14 = vld [vmem:[%s1337_s1 + $0x10] sm:$0xff]  ;;  %v780_v16 = vpack.c.bf16 %v53_v13, %v52_v11 }
   0x4   :  { %v808_v8 = vpack.c.bf16 %v83_v6, %v82_v5  ;;  %v66_v9 = vld [vmem:[%s1337_s1 + $0x100] sm:$0xff]  ;;  %v67_v10 = vld [vmem:[%s1337_s1 + $0x108] sm:$0xff]  ;;  %777 = vmatprep.subr.bf16.mxu0 %v776_v3  ;;  %v37_v15 = vld [vmem:[%s1337_s1 + $0x18] sm:$0xff] }
   0x5   :  { %v810_v12 = vpack.c.bf16 %v67_v10, %v66_v9  ;;  %779 = vmatpush3.bf16.msra.mxu0 %v778_v7  ;;  %v782_v17 = vpack.c.bf16 %v37_v15, %v36_v14  ;;  %v84_v18 = vld [vmem:[%s1337_s1 + $0x190] sm:$0xff]  ;;  %v85_v19 = vld [vmem:[%s1337_s1 + $0x198] sm:$0xff]  ;;  %v54_v23 = vld [vmem:[%s1337_s1 + $0xa0] sm:$0xff] }
   0x6   :  { %809 = vmatprep.subr.bf16.mxu1 %v808_v8  ;;  %v68_v20 = vld [vmem:[%s1337_s1 + $0x110] sm:$0xff]  ;;  %v812_v21 = vpack.c.bf16 %v85_v19, %v84_v18  ;;  %v69_v22 = vld [vmem:[%s1337_s1 + $0x118] sm:$0xff]  ;;  %v55_v24 = vld [vmem:[%s1337_s1 + $0xa8] sm:$0xff]  ;;  %781 = vmatprep.subr.bf16.mxu0 %v780_v16 }
   0x7   :  { %811 = vmatpush3.bf16.msra.mxu1 %v810_v12  ;;  %v814_v25 = vpack.c.bf16 %v69_v22, %v68_v20  ;;  %v784_v26 = vpack.c.bf16 %v55_v24, %v54_v23  ;;  %v38_v27 = vld [vmem:[%s1337_s1 + $0x20] sm:$0xff]  ;;  %v39_v28 = vld [vmem:[%s1337_s1 + $0x28] sm:$0xff]  ;;  %v56_v35 = vld [vmem:[%s1337_s1 + $0xb0] sm:$0xff] }
   0x8   :  { %v86_v29 = vld [vmem:[%s1337_s1 + $0x1a0] sm:$0xff]  ;;  %813 = vmatprep.subr.bf16.mxu1 %v812_v21  ;;  %v87_v30 = vld [vmem:[%s1337_s1 + $0x1a8] sm:$0xff]  ;;  %v786_v33 = vpack.c.bf16 %v39_v28, %v38_v27  ;;  %v57_v36 = vld [vmem:[%s1337_s1 + $0xb8] sm:$0xff] }
   0x9   :  { %v70_v31 = vld [vmem:[%s1337_s1 + $0x120] sm:$0xff]  ;;  %v71_v32 = vld [vmem:[%s1337_s1 + $0x128] sm:$0xff]  ;;  %783 = vmatpush3.bf16.msra.mxu0 %v782_v17  ;;  %v816_v34 = vpack.c.bf16 %v87_v30, %v86_v29  ;;  %v40_v37 = vld [vmem:[%s1337_s1 + $0x30] sm:$0xff]  ;;  %v788_v39 = vpack.c.bf16 %v57_v36, %v56_v35 }
   0xa   :  { %785 = vmatprep.subr.bf16.mxu0 %v784_v26  ;;  %v818_v38 = vpack.c.bf16 %v71_v32, %v70_v31  ;;  %v41_v40 = vld [vmem:[%s1337_s1 + $0x38] sm:$0xff]  ;;  %v88_v41 = vld [vmem:[%s1337_s1 + $0x1b0] sm:$0xff]  ;;  %v58_v46 = vld [vmem:[%s1337_s1 + $0xc0] sm:$0xff] }
   0xb   :  { %815 = vmatpush3.bf16.msra.mxu1 %v814_v25  ;;  %v89_v42 = vld [vmem:[%s1337_s1 + $0x1b8] sm:$0xff]  ;;  %v72_v44 = vld [vmem:[%s1337_s1 + $0x130] sm:$0xff]  ;;  %v59_v47 = vld [vmem:[%s1337_s1 + $0xc8] sm:$0xff]  ;;  %v790_v48 = vpack.c.bf16 %v41_v40, %v40_v37 }
   0xc   :  { %817 = vmatprep.subr.bf16.mxu1 %v816_v34  ;;  %v820_v43 = vpack.c.bf16 %v89_v42, %v88_v41  ;;  %v73_v45 = vld [vmem:[%s1337_s1 + $0x138] sm:$0xff]  ;;  %v90_v49 = vld [vmem:[%s1337_s1 + $0x1c0] sm:$0xff]  ;;  %v91_v50 = vld [vmem:[%s1337_s1 + $0x1c8] sm:$0xff]  ;;  %v792_v52 = vpack.c.bf16 %v59_v47, %v58_v46 }
   0xd   :  { %787 = vmatpush3.bf16.msra.mxu0 %v786_v33  ;;  %v822_v51 = vpack.c.bf16 %v73_v45, %v72_v44  ;;  %v42_v53 = vld [vmem:[%s1337_s1 + $0x40] sm:$0xff]  ;;  %v43_v54 = vld [vmem:[%s1337_s1 + $0x48] sm:$0xff]  ;;  %v824_v56 = vpack.c.bf16 %v91_v50, %v90_v49  ;;  %v60_v58 = vld [vmem:[%s1337_s1 + $0xd0] sm:$0xff]  ;;  %v919_v50 = vmov 0.0|0.0  }
   0xe   :  { %789 = vmatprep.subr.bf16.mxu0 %v788_v39  ;;  %v74_v55 = vld [vmem:[%s1337_s1 + $0x140] sm:$0xff]  ;;  %v75_v57 = vld [vmem:[%s1337_s1 + $0x148] sm:$0xff]  ;;  %v61_v59 = vld [vmem:[%s1337_s1 + $0xd8] sm:$0xff]  ;;  %v794_v62 = vpack.c.bf16 %v43_v54, %v42_v53 }
   0xf   :  { %819 = vmatpush3.bf16.msra.mxu1 %v818_v38  ;;  %v92_v60 = vld [vmem:[%s1337_s1 + $0x1d0] sm:$0xff]  ;;  %v93_v61 = vld [vmem:[%s1337_s1 + $0x1d8] sm:$0xff]  ;;  %v826_v63 = vpack.c.bf16 %v75_v57, %v74_v55  ;;  %v796_v0 = vpack.c.bf16 %v61_v59, %v60_v58  ;;  %v62_v6 = vld [vmem:[%s1337_s1 + $0xe0] sm:$0xff] }
  0x10   :  { %821 = vmatprep.subr.bf16.mxu1 %v820_v43  ;;  %v44_v1 = vld [vmem:[%s1337_s1 + $0x50] sm:$0xff]  ;;  %v45_v2 = vld [vmem:[%s1337_s1 + $0x58] sm:$0xff]  ;;  %v828_v4 = vpack.c.bf16 %v93_v61, %v92_v60  ;;  %v63_v7 = vld [vmem:[%s1337_s1 + $0xe8] sm:$0xff] }
  0x11   :  { %791 = vmatpush3.bf16.msra.mxu0 %v790_v48  ;;  %v76_v3 = vld [vmem:[%s1337_s1 + $0x150] sm:$0xff]  ;;  %v77_v5 = vld [vmem:[%s1337_s1 + $0x158] sm:$0xff]  ;;  %v94_v8 = vld [vmem:[%s1337_s1 + $0x1e0] sm:$0xff]  ;;  %v798_v10 = vpack.c.bf16 %v45_v2, %v44_v1  ;;  %v800_v14 = vpack.c.bf16 %v63_v7, %v62_v6 }
  0x12   :  { %793 = vmatprep.subr.bf16.mxu0 %v792_v52  ;;  %v95_v9 = vld [vmem:[%s1337_s1 + $0x1e8] sm:$0xff]  ;;  %v46_v11 = vld [vmem:[%s1337_s1 + $0x60] sm:$0xff]  ;;  %v830_v13 = vpack.c.bf16 %v77_v5, %v76_v3  ;;  %v64_v19 = vld [vmem:[%s1337_s1 + $0xf0] sm:$0xff] }
  0x13   :  { %823 = vmatpush3.bf16.msra.mxu1 %v822_v51  ;;  %v28_v12 = vld [vmem:[%s1336_s0 + $0x8] sm:$0xff]  ;;  %v78_v16 = vld [vmem:[%s1337_s1 + $0x160] sm:$0xff]  ;;  %v832_v18 = vpack.c.bf16 %v95_v9, %v94_v8  ;;  %v65_v20 = vld [vmem:[%s1337_s1 + $0xf8] sm:$0xff] }
  0x14   :  { %825 = vmatprep.subr.bf16.mxu1 %v824_v56  ;;  %v47_v15 = vld [vmem:[%s1337_s1 + $0x68] sm:$0xff]  ;;  %207 = vmatprep.mubr.f32.mxu0 %v28_v12  ;;  %v30_v21 = vld [vmem:[%s1336_s0 + $0x18] sm:$0xff]  ;;  %v96_v22 = vld [vmem:[%s1337_s1 + $0x1f0] sm:$0xff]  ;;  %v804_v26 = vpack.c.bf16 %v65_v20, %v64_v19 }
  0x15   :  { %795 = vmatpush3.bf16.msra.mxu0 %v794_v62  ;;  %v79_v17 = vld [vmem:[%s1337_s1 + $0x168] sm:$0xff]  ;;  %v97_v23 = vld [vmem:[%s1337_s1 + $0x1f8] sm:$0xff]  ;;  %277 = vmatprep.mubr.f32.mxu1 %v30_v21  ;;  %v802_v24 = vpack.c.bf16 %v47_v15, %v46_v11  ;;  %v48_v27 = vld [vmem:[%s1337_s1 + $0x70] sm:$0xff] }
  0x16   :  { %797 = vmatprep.subr.bf16.mxu0 %v796_v0  ;;  %v834_v25 = vpack.c.bf16 %v79_v17, %v78_v16  ;;  %v49_v28 = vld [vmem:[%s1337_s1 + $0x78] sm:$0xff]  ;;  %v80_v29 = vld [vmem:[%s1337_s1 + $0x170] sm:$0xff]  ;;  %v836_v30 = vpack.c.bf16 %v97_v23, %v96_v22  ;;  %v114_v32 = vld [vmem:[%s1337_s1 + $0x280] sm:$0xff] }
  0x17   :  { %827 = vmatpush3.bf16.msra.mxu1 %v826_v63  ;;  %v81_v31 = vld [vmem:[%s1337_s1 + $0x178] sm:$0xff]  ;;  %v115_v33 = vld [vmem:[%s1337_s1 + $0x288] sm:$0xff]  ;;  %v806_v34 = vpack.c.bf16 %v49_v28, %v48_v27  ;;  %v98_v37 = vld [vmem:[%s1337_s1 + $0x200] sm:$0xff] }
  0x18   :  { %829 = vmatprep.subr.bf16.mxu1 %v828_v4  ;;  %v838_v35 = vpack.c.bf16 %v81_v31, %v80_v29  ;;  %v840_v36 = vpack.c.bf16 %v115_v33, %v114_v32  ;;  %v99_v38 = vld [vmem:[%s1337_s1 + $0x208] sm:$0xff]  ;;  %v116_v39 = vld [vmem:[%s1337_s1 + $0x290] sm:$0xff]  ;;  %v117_v40 = vld [vmem:[%s1337_s1 + $0x298] sm:$0xff] }
  0x19   :  { %799 = vmatpush3.bf16.msra.mxu0 %v798_v10  ;;  %v27_v41 = vld [vmem:[%s1336_s0] sm:$0xff]  ;;  %v842_v42 = vpack.c.bf16 %v99_v38, %v98_v37  ;;  %v29_v43 = vld [vmem:[%s1336_s0 + $0x10] sm:$0xff]  ;;  %v844_v45 = vpack.c.bf16 %v117_v40, %v116_v39  ;;  %v101_v46 = vld [vmem:[%s1337_s1 + $0x218] sm:$0xff] }
  0x1a   :  { %801 = vmatprep.subr.bf16.mxu0 %v800_v14  ;;  %v100_v44 = vld [vmem:[%s1337_s1 + $0x210] sm:$0xff]  ;;  %v118_v47 = vld [vmem:[%s1337_s1 + $0x2a0] sm:$0xff]  ;;  %v119_v48 = vld [vmem:[%s1337_s1 + $0x2a8] sm:$0xff] }
  0x1b   :  { %831 = vmatpush3.bf16.msra.mxu1 %v830_v13  ;;  %v32_v49 = vld [vmem:[%s1336_s0 + $0x28] sm:$0xff]  ;;  %v130_v51 = vld [vmem:[%s1337_s1 + $0x300] sm:$0xff] }
  0x1c   :  { %833 = vmatprep.subr.bf16.mxu1 %v832_v18  ;;  %v131_v52 = vld [vmem:[%s1337_s1 + $0x308] sm:$0xff] }
  0x1d   :  { %803 = vmatpush3.bf16.msra.mxu0 %v802_v24  ;;  %v873_v53 = vpack.c.bf16 %v131_v52, %v130_v51 }
  0x1e   :  { %805 = vmatprep.subr.bf16.mxu0 %v804_v26 }
  0x1f   :  { %835 = vmatpush3.bf16.msra.mxu1 %v834_v25 }
  0x20   :  { %837 = vmatprep.subr.bf16.mxu1 %v836_v30 }
  0x21   :  { %807 = vmatpush3.bf16.msra.mxu0 %v806_v34 }
  0x22   :  { %841 = vmatprep.subr.bf16.mxu0 %v840_v36 }
  0x23   :  { %839 = vmatpush3.bf16.msra.mxu1 %v838_v35 }
  0x24   :  { %872 = vmatprep.subr.bf16.mxu1 %v919_v50  ;;  %208 = vmatmul.mubr.f32.vlgmr.msra.gmra.mrb[0].mxu0 %v27_v41 }
  0x25   :  { %12 = vsyncpa [#allocation3], 0  ;;  %843 = vmatpush3.bf16.msra.mxu0 %v842_v42  ;;  %v846_v54 = vpack.c.bf16 %v101_v46, %v100_v44  ;;  %v848_v55 = vpack.c.bf16 %v119_v48, %v118_v47  ;;  %v102_v56 = vld [vmem:[%s1337_s1 + $0x220] sm:$0xff]  ;;  %v103_v57 = vld [vmem:[%s1337_s1 + $0x228] sm:$0xff]  ;;  %347 = vmatprep.mubr.f32.mxu0 %v32_v49  ;;  %vm920_vm0 = vmmov 0   ;;  %v921_v60 = vmov 0.0  }
  0x26   :  { %278 = vmatmul.mubr.f32.vlgmr.msra.gmra.mrb[0].mxu1 %v29_v43  ;;  %845 = vmatprep.subr.bf16.mxu0 %v844_v45  ;;  %v120_v58 = vld [vmem:[%s1337_s1 + $0x2b0] sm:$0xff]  ;;  %v121_v59 = vld [vmem:[%s1337_s1 + $0x2b8] sm:$0xff]  ;;  %vm139_vm1 = vcmask 130048   ;;  %v850_v62 = vpack.c.bf16 %v103_v57, %v102_v56  ;;  %v122_v2 = vld [vmem:[%s1337_s1 + $0x2c0] sm:$0xff]  ;;  %vm435_vm2 = vcmask 261120  }
  0x27   :  { %874 = vmatpush3.bf16.msra.mxu1 %v873_v53  ;;  %751 = vmatprep.mubr.msk.f32.mxu1 %vm920_vm0, %v921_v60  ;;  %v33_v61 = vld [vmem:[%s1336_s0 + $0x30] sm:$0xff]  ;;  %v852_v63 = vpack.c.bf16 %v121_v59, %v120_v58  ;;  %v105_v1 = vld [vmem:[%s1337_s1 + $0x238] sm:$0xff]  ;;  %v123_v3 = vld [vmem:[%s1337_s1 + $0x2c8] sm:$0xff] }
  0x28   :  { %875 = vmatprep.subr.bf16.mxu1 %v919_v50  ;;  %v104_v0 = vld [vmem:[%s1337_s1 + $0x230] sm:$0xff]  ;;  %v856_v5 = vpack.c.bf16 %v123_v3, %v122_v2  ;;  %v106_v6 = vld [vmem:[%s1337_s1 + $0x240] sm:$0xff]  ;;  %v107_v7 = vld [vmem:[%s1337_s1 + $0x248] sm:$0xff] }
  0x29   :  { %847 = vmatpush3.bf16.msra.mxu0 %v846_v54  ;;  %v854_v4 = vpack.c.bf16 %v105_v1, %v104_v0  ;;  %v124_v8 = vld [vmem:[%s1337_s1 + $0x2d0] sm:$0xff]  ;;  %v125_v9 = vld [vmem:[%s1337_s1 + $0x2d8] sm:$0xff]  ;;  %v858_v10 = vpack.c.bf16 %v107_v7, %v106_v6  ;;  %v126_v14 = vld [vmem:[%s1337_s1 + $0x2e0] sm:$0xff] }
  0x2a   :  { %849 = vmatprep.subr.bf16.mxu0 %v848_v55  ;;  %752 = vmatmul.mubr.msk.f32.vlgmr.msra.gmra.mrb[2].mxu1 %vm139_vm1, %v33_v61  ;;  %v860_v11 = vpack.c.bf16 %v125_v9, %v124_v8  ;;  %v108_v12 = vld [vmem:[%s1337_s1 + $0x250] sm:$0xff]  ;;  %v109_v13 = vld [vmem:[%s1337_s1 + $0x258] sm:$0xff]  ;;  %v127_v15 = vld [vmem:[%s1337_s1 + $0x2e8] sm:$0xff] }
  0x2b   :  { %762 = vmatprep.mubr.msk.f32.mxu1 %vm920_vm0, %v921_v60  ;;  %v862_v16 = vpack.c.bf16 %v109_v13, %v108_v12  ;;  %v864_v17 = vpack.c.bf16 %v127_v15, %v126_v14  ;;  %v110_v18 = vld [vmem:[%s1337_s1 + $0x260] sm:$0xff]  ;;  %v111_v19 = vld [vmem:[%s1337_s1 + $0x268] sm:$0xff]  ;;  %v128_v20 = vld [vmem:[%s1337_s1 + $0x2f0] sm:$0xff] }
  0x2c   :  { %v129_v21 = vld [vmem:[%s1337_s1 + $0x2f8] sm:$0xff]  ;;  %v866_v22 = vpack.c.bf16 %v111_v19, %v110_v18  ;;  %v112_v24 = vld [vmem:[%s1337_s1 + $0x270] sm:$0xff]  ;;  %v31_v27 = vld [vmem:[%s1336_s0 + $0x20] sm:$0xff] }
  0x2d   :  { %851 = vmatpush3.bf16.msra.mxu0 %v850_v62  ;;  %v868_v23 = vpack.c.bf16 %v129_v21, %v128_v20  ;;  %v113_v25 = vld [vmem:[%s1337_s1 + $0x278] sm:$0xff]  ;;  %v424_v28 = vld [vmem:[%s1339_s3] sm:$0xff]  ;;  %v425_v29 = vld [vmem:[%s1339_s3 + $0x8] sm:$0xff] }
  0x2e   :  { %853 = vmatprep.subr.bf16.mxu0 %v852_v63  ;;  %v870_v26 = vpack.c.bf16 %v113_v25, %v112_v24  ;;  %v876_v30 = vpack.c.bf16 %v425_v29, %v424_v28  ;;  %v426_v31 = vld [vmem:[%s1339_s3 + $0x10] sm:$0xff]  ;;  %v427_v32 = vld [vmem:[%s1339_s3 + $0x18] sm:$0xff]  ;;  %v623_v35 = vld [vmem:[%s1338_s2] ss:$0 sm:$0xff] }
  0x2f   :  { %v879_v33 = vpack.c.bf16 %v427_v32, %v426_v31  ;;  %v510_v49 = vld [vmem:[%s1341_s5] sm:$0xff]  ;;  %v511_v51 = vld [vmem:[%s1341_s5 + $0x8] sm:$0xff]  ;;  %v512_v55 = vld [vmem:[%s1341_s5 + $0x10] sm:$0xff] }
  0x30   :  { %877 = vmatpush3.bf16.msra.mxu1 %v876_v30  ;;  %v882_v53 = vpack.c.bf16 %v511_v51, %v510_v49  ;;  %v513_v56 = vld [vmem:[%s1341_s5 + $0x18] sm:$0xff]  ;;  %v625_v58 = vld [vmem:[%s1340_s4] ss:$0 sm:$0xff]  ;;  %s922_s4 = smov [#allocation2]  }
  0x31   :  { %855 = vmatpush3.bf16.msra.mxu0 %v854_v4  ;;  %878 = vmatprep.subr.bf16.mxu1 %v919_v50  ;;  %v885_v57 = vpack.c.bf16 %v513_v56, %v512_v55  ;;  %v627_v0 = vld [vmem:[%s1342_s6] ss:$0 sm:$0xff]  ;;  %s615_s5 = sshll.u32 %s922_s4, 4  ;;  %s616_s5 = int_to_ptr.vmem [resolvable:$true] %s615_s5 }
  0x32   :  { %857 = vmatprep.subr.bf16.mxu0 %v856_v5  ;;  %s895_s6 = scalar_lea.vmem %s616_s5, 128  ;;  %p900_p1 = scmp.lt.s32.totalorder %s616_s5, %s616_s5 }
  0x33   :  { %p896_p0 = scmp.ne.s32.totalorder %s616_s5, %s895_s6  ;;  %p901_p2 = scmp.lt.s32.totalorder %s895_s6, %s895_s6 }
  0x34   :  { %880 = vmatpush3.bf16.msra.mxu1 %v879_v33 }
  0x35   :  { %859 = vmatpush3.bf16.msra.mxu0 %v858_v10  ;;  %881 = vmatprep.subr.bf16.mxu1 %v919_v50  ;;  %p902_p3 = por %p901_p2, %p900_p1 }
  0x36   :  { %861 = vmatprep.subr.bf16.mxu0 %v860_v11 }
  0x37   :  { %p903_p4 = pnand %p902_p3, %p896_p0 }
  0x39   :  { %863 = vmatpush3.bf16.msra.mxu0 %v862_v16 }
  0x3a   :  { %865 = vmatprep.subr.bf16.mxu0 %v864_v17 }
  0x3d   :  { %867 = vmatpush3.bf16.msra.mxu0 %v866_v22 }
  0x3e   :  { %869 = vmatprep.subr.bf16.mxu0 %v868_v23 }
  0x41   :  { %871 = vmatpush3.bf16.msra.mxu0 %v870_v26 }
  0x44   :  { %348 = vmatmul.mubr.f32.vlgmr.msra.gmra.mrb[2].mxu0 %v31_v27 }
  0xf7   :  { %v661_v34 = vpop.f32.mrb[0].mxu0 }
  0xf8   :  { %v662_v36 = vpop.f32.mrb[1].mxu0 }
  0xf9   :  { %v696_v37 = vpop.f32.mrb[0].mxu1  ;;  %v663_v38 = vadd.f32 %v662_v36, %v661_v34 }
  0xfa   :  { %v697_v39 = vpop.f32.mrb[1].mxu1 }
  0xfb   :  { %v698_v40 = vadd.f32 %v697_v39, %v696_v37  ;;  %v210_v41 = vadd.f32 %v663_v38, %v623_v35 }
  0xfd   :  { %v280_v42 = vadd.f32 %v698_v40, %v210_v41  ;;  %v419_v43 = vpop.f32.mrb[2].mxu1 }
  0xfe   :  { %v753_v44 = vpop.f32.mrb[3].mxu1 }
 0x117   :  { %v731_v45 = vpop.f32.mrb[2].mxu0 }
 0x118   :  { %v732_v46 = vpop.f32.mrb[3].mxu0 }
 0x119   :  { %v733_v47 = vadd.f32 %v732_v46, %v731_v45 }
 0x11b   :  { %v350_v48 = vadd.f32 %v733_v47, %v280_v42 }
 0x11d   :  { %v420_v52 = vadd.f32 %v419_v43, %v350_v48 }
 0x11f   :  { %v423_v54 = vmax.f32 %v420_v52, 0.0 }
 0x121   :  { %763 = vmatmul.mubr.msk.f32.vlgmr.msra.gmra.mrb[4].mxu1 %vm435_vm2, %v423_v54 }
 0x122   :  { %883 = vmatpush3.bf16.msra.mxu1 %v882_v53  ;;  %773 = vmatprep.mubr.msk.f32.mxu1 %vm920_vm0, %v921_v60 }
 0x123   :  { %884 = vmatprep.subr.bf16.mxu1 %v919_v50  ;;  %v594_v50 = vlaneseq }
 0x125   :  { %v595_v63 = vand.u32 127, %v594_v50 }
 0x126   :  { %886 = vmatpush3.bf16.msra.mxu1 %v885_v57 }
 0x127   :  { %vm596_vm3 = vcmp.lt.s32.totalorder %v595_v63, 10 }
 0x1f4   :  { %v505_v59 = vpop.f32.mrb[4].mxu1 }
 0x1f5   :  { %v506_v61 = vadd.f32 %v625_v58, %v505_v59  ;;  %v764_v62 = vpop.f32.mrb[5].mxu1 }
 0x1f7   :  { %v509_v60 = vmax.f32 %v506_v61, 0.0 }
 0x1f9   :  { %774 = vmatmul.mubr.msk.f32.vlgmr.msra.gmra.mrb[6].mxu1 %vm435_vm2, %v509_v60 }
 0x2cc   :  { %v590_v1 = vpop.f32.mrb[6].mxu1 }
 0x2cd   :  { %v591_v2 = vadd.f32 %v627_v0, %v590_v1  ;;  %v775_v3 = vpop.f32.mrb[7].mxu1 }
 0x2cf   :  { %v597_v4 = vsel %vm596_vm3, %v591_v2, -inf }
 0x2d0   :  { %598 = vmax.xlane.f32.xlu0 %v597_v4 }
 0x35d   :  { %v599_v5 = vpop.xlane.xlu0 %598 }
 0x35e   :  { %v600_v6 = vsub.f32 %v597_v4, %v599_v5 }
 0x360   :  { %v601_v7 = vmul.f32 1.442695, %v600_v6 }
 0x362   :  { %891 = vpow2.f32 %v601_v7 }
 0x36c   :  { %v892_v8 = vpop.eup %891 }
 0x36d   :  { %603 = vadd.xlane.f32.xlu0 %v892_v8 }
 0x3fa   :  { %v604_v9 = vpop.xlane.xlu0 %603 }
 0x3fb   :  { %893 = vlog2.f32 %v604_v9 }
 0x405   :  { %v894_v10 = vpop.eup %893 }
 0x406   :  { %v606_v11 = vmul.f32 0.6931472, %v894_v10 }
 0x408   :  { %v607_v12 = vsub.f32 %v600_v6, %v606_v11 }
 0x40a   :  { %608 = vst [vmem:[#allocation2] sm:$0xff] %v607_v12 }
 0x40b   :  { %906 = shalt.err (!%p903_p4)
}
 0x40c   :  { %s907_s24 = scalar_lea.hbm %s1343_s7, 128 }
 0x40d   :  { %p908_p5 = scmp.ne.s32.totalorder %s1343_s7, %s907_s24  ;;  %p911_p6 = scmp.lt.u32.totalorder %s907_s24, %s1343_s7 }
 0x40f   :  { %p913_p7 = pnand %p911_p6, %p908_p5 }
 0x411   :  { %916 = shalt.err (!%p913_p7)
}
 0x412   :  { %618 = dma.vmem_to_hbm [thread:$0]  %s616_s5, 128, %s1343_s7, [#allocation3]  }
 0x413   :  { %917 = dma.done.wait [#allocation3], 128  }
 0x414   :  { %918 = vsyncadd [#allocation3], 4294967168 }
 0x415   :  { %622 = vsyncpa [#allocation3], 1 }

</bundles_post_ra>
